<compile_context>
chip_gen: v7x
topology: tpu7x:2x2x1
jax: 0.10.0
libtpu: 0.0.40
codegen_flags: <defaults>
</compile_context>

<pallas_src>
import functools

import jax
import jax.numpy as jnp
from jax.experimental import pallas as pl
from jax.experimental.pallas import tpu as pltpu

_LANE = 128
_SUBLANE = 8
_NUM_FEATS = 4


def _round_up(x, m):
    return ((x + m - 1) // m) * m


def _user_emb_kernel(idx_ref, tab_ref, out_ref, *, offsets):
    """Fused gather+concat via one block-diagonal one-hot matmul.

    idx_ref : (TB, 4)   int32  packed [gender, age, occupation, area] indices
    tab_ref : (Vp, 4*D) f32    block-diagonal fused embedding table
    out_ref : (TB, 4*D) f32    concatenated embeddings
    """
    TB = idx_ref.shape[0]
    Vp = tab_ref.shape[0]

    idx = idx_ref[...]                                        # (TB, 4) int32
    col = jax.lax.broadcasted_iota(jnp.int32, (TB, Vp), 1)    # (TB, Vp)

    # Multi-hot LHS: one 1.0 per feature segment per row. Out-of-range
    # indices contribute an all-zero row for that feature (torch.nn.Embedding
    # would raise); padded table rows are zero, so segments cannot alias.
    multihot = jnp.zeros((TB, Vp), jnp.float32)
    for f in range(_NUM_FEATS):
        shifted = idx[:, f:f + 1] + offsets[f]                # (TB, 1)
        multihot = multihot + (shifted == col).astype(jnp.float32)

    # One (TB, Vp) x (Vp, 4D) MXU matmul == gather of all 4 features + concat.
    # Mosaic's f32 matmul path reproduces table rows to the checked tolerance.
    out_ref[...] = jnp.dot(multihot, tab_ref[...],
                           preferred_element_type=jnp.float32)


def fuse_user_params(params):
    """Precompute (once) the block-diagonal fused table and row offsets."""
    tabs = [params["gender"], params["age"], params["occupation"], params["area"]]
    D = tabs[0].shape[1]
    offsets, off = [], 0
    for t in tabs:
        offsets.append(off)
        off += t.shape[0]
    v_pad = _round_up(max(off, _LANE), _LANE)

    fused = jnp.zeros((v_pad, _NUM_FEATS * D), jnp.float32)
    for f, t in enumerate(tabs):
        fused = jax.lax.dynamic_update_slice(
            fused, t.astype(jnp.float32), (offsets[f], f * D))
    return fused, tuple(offsets)


def user_forward(gender_idx, age_idx, occupation_idx, area_idx,
                 fused_table, offsets, *, block_b=512):
    """Returns (B, 4*D) float32 == torch.cat of the four embedding lookups."""
    B = gender_idx.shape[0]
    Vp, F4D = fused_table.shape

    # Pack the four index vectors into a single (B, 4) int32 operand.
    idx = jnp.stack(
        [jnp.asarray(i, jnp.int32).reshape(B)
         for i in (gender_idx, age_idx, occupation_idx, area_idx)],
        axis=1)                                                # (B, 4)

    # Batch tile: multiple of 8 (f32 sublane); pad B up to a whole tile.
    TB = _round_up(min(block_b, max(B, _SUBLANE)), _SUBLANE)
    Bp = _round_up(B, TB)
    if Bp != B:
        idx = jnp.pad(idx, ((0, Bp - B), (0, 0)))              # pad -> index 0

    grid = (Bp // TB,)
    kernel = functools.partial(_user_emb_kernel, offsets=offsets)

    out = pl.pallas_call(
        kernel,
        out_shape=jax.ShapeDtypeStruct((Bp, F4D), jnp.float32),
        grid_spec=pltpu.PrefetchScalarGridSpec(
            num_scalar_prefetch=0,
            grid=grid,
            in_specs=[
                pl.BlockSpec((TB, _NUM_FEATS), lambda i: (i, 0)),  # indices
                pl.BlockSpec((Vp, F4D), lambda i: (0, 0)),         # table stays resident
            ],
            out_specs=pl.BlockSpec((TB, F4D), lambda i: (i, 0)),
        ),
        compiler_params=pltpu.CompilerParams(
            dimension_semantics=("parallel",),   # megacore on v7x; no-op on v5e/v6e
        ),
    )(idx, fused_table)

    return out[:B] if Bp != B else out


def init_params(config, key):
    """Deterministic init mimicking nn.Embedding default N(0, 1)."""
    D = config["embedding_dim"]
    k1, k2, k3, k4 = jax.random.split(key, 4)
    return {
        "gender": jax.random.normal(k1, (config["num_gender"] + 1, D), jnp.float32),
        "age": jax.random.normal(k2, (config["num_age"] + 1, D), jnp.float32),
        "occupation": jax.random.normal(k3, (config["num_occupation"] + 1, D), jnp.float32),
        "area": jax.random.normal(k4, (config["num_zipcode"] + 1, D), jnp.float32),
    }


if __name__ == "__main__":
    config = {
        "num_gender": 2,
        "num_age": 7,
        "num_occupation": 21,
        "num_zipcode": 30,
        "embedding_dim": 32,
    }
    B = 8

    key = jax.random.PRNGKey(0)
    kp, kg, ka, ko, kz = jax.random.split(key, 5)

    params = init_params(config, kp)
    fused_table, offsets = fuse_user_params(params)   # precomputed once

    gender_idx = jax.random.randint(kg, (B,), 0, config["num_gender"] + 1, jnp.int32)
    age_idx = jax.random.randint(ka, (B,), 0, config["num_age"] + 1, jnp.int32)
    occupation_idx = jax.random.randint(ko, (B,), 0, config["num_occupation"] + 1, jnp.int32)
    area_idx = jax.random.randint(kz, (B,), 0, config["num_zipcode"] + 1, jnp.int32)

    out = user_forward(gender_idx, age_idx, occupation_idx, area_idx,
                       fused_table, offsets)
    out = jax.block_until_ready(out)

    # Reference: plain-JAX gather + concat (same semantics as the torch module).
    ref = jnp.concatenate(
        [params["gender"][gender_idx],
         params["age"][age_idx],
         params["occupation"][occupation_idx],
         params["area"][area_idx]], axis=1)
    assert out.shape == (B, 4 * config["embedding_dim"])
    assert jnp.allclose(out, ref, atol=1e-5), "mismatch vs reference"

    print("KERNEL_OK")
</pallas_src>

<mosaic_0001>
module attributes {stable_mosaic.version = 11 : i64} {
  func.func @_user_emb_kernel(%arg0: i32, %arg1: memref<8x4xi32, #tpu.memory_space<vmem>>, %arg2: memref<128x128xf32, #tpu.memory_space<vmem>>, %arg3: memref<8x128xf32, #tpu.memory_space<vmem>>) attributes {dimension_semantics = [#tpu.dimension_semantics<parallel>], iteration_bounds = array<i64: 1>, scalar_prefetch = 0 : i64, scratch_operands = 0 : i64, tpu.core_type = #tpu.core_type<tc>, window_params = [{transform_indices = @transform_0, window_bounds = array<i64: 8, 4>}, {pipeline_mode = #tpu.pipeline_mode<synchronous>, transform_indices = @transform_1, window_bounds = array<i64: 128, 128>}, {transform_indices = @transform_2, window_bounds = array<i64: 8, 128>}]} {
    %c0 = arith.constant 0 : index
    %c0_0 = arith.constant 0 : index
    %0 = vector.load %arg1[%c0, %c0_0] : memref<8x4xi32, #tpu.memory_space<vmem>>, vector<8x4xi32>
    %1 = tpu.iota {dimensions = array<i32: 1>} : vector<8x128xi32>
    %cst = arith.constant 0.000000e+00 : f32
    %2 = vector.broadcast %cst : f32 to vector<8x128xf32>
    %3 = vector.extract_strided_slice %0 {offsets = [0, 0], sizes = [8, 1], strides = [1, 1]} : vector<8x4xi32> to vector<8x1xi32>
    %c0_i32 = arith.constant 0 : i32
    %4 = vector.broadcast %c0_i32 : i32 to vector<8x1xi32>
    %5 = arith.addi %3, %4 : vector<8x1xi32>
    %6 = vector.broadcast %5 : vector<8x1xi32> to vector<8x128xi32>
    %7 = arith.cmpi eq, %6, %1 : vector<8x128xi32>
    %8 = arith.extui %7 : vector<8x128xi1> to vector<8x128xi32>
    %9 = arith.sitofp %8 : vector<8x128xi32> to vector<8x128xf32>
    %10 = arith.addf %2, %9 : vector<8x128xf32>
    %11 = vector.extract_strided_slice %0 {offsets = [0, 1], sizes = [8, 1], strides = [1, 1]} : vector<8x4xi32> to vector<8x1xi32>
    %c3_i32 = arith.constant 3 : i32
    %12 = vector.broadcast %c3_i32 : i32 to vector<8x1xi32>
    %13 = arith.addi %11, %12 : vector<8x1xi32>
    %14 = vector.broadcast %13 : vector<8x1xi32> to vector<8x128xi32>
    %15 = arith.cmpi eq, %14, %1 : vector<8x128xi32>
    %16 = arith.extui %15 : vector<8x128xi1> to vector<8x128xi32>
    %17 = arith.sitofp %16 : vector<8x128xi32> to vector<8x128xf32>
    %18 = arith.addf %10, %17 : vector<8x128xf32>
    %19 = vector.extract_strided_slice %0 {offsets = [0, 2], sizes = [8, 1], strides = [1, 1]} : vector<8x4xi32> to vector<8x1xi32>
    %c11_i32 = arith.constant 11 : i32
    %20 = vector.broadcast %c11_i32 : i32 to vector<8x1xi32>
    %21 = arith.addi %19, %20 : vector<8x1xi32>
    %22 = vector.broadcast %21 : vector<8x1xi32> to vector<8x128xi32>
    %23 = arith.cmpi eq, %22, %1 : vector<8x128xi32>
    %24 = arith.extui %23 : vector<8x128xi1> to vector<8x128xi32>
    %25 = arith.sitofp %24 : vector<8x128xi32> to vector<8x128xf32>
    %26 = arith.addf %18, %25 : vector<8x128xf32>
    %27 = vector.extract_strided_slice %0 {offsets = [0, 3], sizes = [8, 1], strides = [1, 1]} : vector<8x4xi32> to vector<8x1xi32>
    %c33_i32 = arith.constant 33 : i32
    %28 = vector.broadcast %c33_i32 : i32 to vector<8x1xi32>
    %29 = arith.addi %27, %28 : vector<8x1xi32>
    %30 = vector.broadcast %29 : vector<8x1xi32> to vector<8x128xi32>
    %31 = arith.cmpi eq, %30, %1 : vector<8x128xi32>
    %32 = arith.extui %31 : vector<8x128xi1> to vector<8x128xi32>
    %33 = arith.sitofp %32 : vector<8x128xi32> to vector<8x128xf32>
    %34 = arith.addf %26, %33 : vector<8x128xf32>
    %c0_1 = arith.constant 0 : index
    %c0_2 = arith.constant 0 : index
    %35 = vector.load %arg2[%c0_1, %c0_2] : memref<128x128xf32, #tpu.memory_space<vmem>>, vector<128x128xf32>
    %cst_3 = arith.constant dense<0.000000e+00> : vector<8x128xf32>
    %36 = tpu.matmul %34, %35, %cst_3 {dimension_numbers = #tpu.dot_dimension_numbers<[1], [0], [0], [1], [0, 0, 1, 1], [], []>} : vector<8x128xf32>, vector<128x128xf32>, vector<8x128xf32> -> vector<8x128xf32>
    %c0_4 = arith.constant 0 : index
    %c0_5 = arith.constant 0 : index
    %37 = vector.load %arg3[%c0_4, %c0_5] : memref<8x128xf32, #tpu.memory_space<vmem>>, vector<8x128xf32>
    tpu.vector_store %arg3[%c0_4, %c0_5], %36 {strides = array<i32>} : memref<8x128xf32, #tpu.memory_space<vmem>>, vector<8x128xf32>,
    return
  }
  func.func @transform_0(%arg0: i32) -> (i32, i32) {
    %c0_i32 = arith.constant 0 : i32
    %c0_i32_0 = arith.constant 0 : i32
    return %arg0, %c0_i32 : i32, i32
  }
  func.func @transform_1(%arg0: i32) -> (i32, i32) {
    %c0_i32 = arith.constant 0 : i32
    %c0_i32_0 = arith.constant 0 : i32
    %c0_i32_1 = arith.constant 0 : i32
    return %c0_i32, %c0_i32_0 : i32, i32
  }
  func.func @transform_2(%arg0: i32) -> (i32, i32) {
    %c0_i32 = arith.constant 0 : i32
    %c0_i32_0 = arith.constant 0 : i32
    return %arg0, %c0_i32 : i32, i32
  }
}

</mosaic_0001>

<bundles_post_ra>
// kernel: tpu_custom_call.1
= control target key start
LH: loop header
LB: loop body
LE: loop exit
PB: predicated region body
PF: predicated region fallthrough
CT: control target
= control target key end

     0   :  { %7 = vsyncpa [#allocation3], 0  ;;  %s359_s0 = inlined_call_operand.vmem [shape: s32[8,4], index: 0, kind: input, shape index: {}]   ;;  %s360_s1 = inlined_call_operand.hbm [shape: f32[128,128], index: 1, kind: input, shape index: {}]   ;;  %s361_s2 = inlined_call_operand.hbm [shape: f32[8,128], index: 2, kind: output, shape index: {}]  }
   0x1   :  { %8 = vsyncpa [#allocation4], 0  ;;  %s306_s9 = smov [#allocation2]   ;;  %s258_s13 = scalar_lea.hbm %s360_s1, 2048 }
   0x2   :  { %s16_s10 = sshll.u32 %s306_s9, 4  ;;  %p259_p0 = scmp.ne.s32.totalorder %s360_s1, %s258_s13  ;;  %s17_s10 = int_to_ptr.vmem [resolvable:$true] %s16_s10 }
   0x3   :  { %p262_p1 = scmp.lt.u32.totalorder %s258_s13, %s360_s1 }
   0x5   :  { %p264_p2 = pnand %p262_p1, %p259_p0 }
   0x7   :  { %267 = shalt.err (!%p264_p2)
}
   0x8   :  { %s268_s18 = scalar_lea.vmem %s17_s10, 2048  ;;  %p273_p4 = scmp.lt.s32.totalorder %s17_s10, %s17_s10 }
   0x9   :  { %p269_p3 = scmp.ne.s32.totalorder %s17_s10, %s268_s18  ;;  %p274_p5 = scmp.lt.s32.totalorder %s268_s18, %s268_s18 }
   0xb   :  { %p275_p6 = por %p274_p5, %p273_p4 }
   0xd   :  { %p276_p7 = pnand %p275_p6, %p269_p3 }
   0xf   :  { %279 = shalt.err (!%p276_p7)
}
  0x10   :  { %s307_s19 = smov 128   ;;  %s308_s20 = smov 8  }
  0x11   :  { %22 = dma.hbm_to_vmem [thread:$0]  %s360_s1, 2048, %s17_s10, [#allocation3], %s307_s19, %s307_s19, %s308_s20  }
  0x12   :  { %302 = dma.done.wait [#allocation3], 2048  }
  0x13   :  { %303 = vsyncadd [#allocation3], 4294965248  ;;  %v309_v0 = vmov 0   ;;  %v310_v1 = vmov 2   ;;  %v311_v2 = vmov 0.0|0.0   ;;  %v26_v3 = vld [vmem:[%s359_s0] sm:$0xff]  ;;  %v27_v34 = vlaneseq }
  0x14   :  { %253 = vset.pattern.permute.xlu0 %v309_v0  ;;  %255 = vset.pattern.permute.xlu1 %v310_v1  ;;  %v60_v4 = vld [vmem:[#allocation2] sm:$0xff]  ;;  %v61_v5 = vld [vmem:[#allocation2 + $0x8] sm:$0xff]  ;;  %v44_v6 = vadd.s32 11, %v26_v3  ;;  %v62_v8 = vld [vmem:[#allocation2 + $0x10] sm:$0xff]  ;;  %v36_v10 = vadd.s32 3, %v26_v3  ;;  %v52_v12 = vadd.s32 33, %v26_v3 }
  0x15   :  { %218 = vmatprep.subr.bf16.mxu0 %v311_v2  ;;  %30 = vperm.xlu0 %253, %v26_v3   ;;  %v219_v7 = vpack.c.bf16 %v61_v5, %v60_v4  ;;  %v63_v9 = vld [vmem:[#allocation2 + $0x18] sm:$0xff]  ;;  %v64_v13 = vld [vmem:[#allocation2 + $0x20] sm:$0xff]  ;;  %v65_v14 = vld [vmem:[#allocation2 + $0x28] sm:$0xff]  ;;  %v312_v15 = vmov 1   ;;  %v313_v16 = vmov 3   ;;  %vm314_vm0 = vmmov 0  }
  0x16   :  { %46 = vperm.xlu1 %255, %v44_v6   ;;  %v222_v11 = vpack.c.bf16 %v63_v9, %v62_v8  ;;  %v225_v17 = vpack.c.bf16 %v65_v14, %v64_v13  ;;  %v66_v18 = vld [vmem:[#allocation2 + $0x30] sm:$0xff]  ;;  %v67_v19 = vld [vmem:[#allocation2 + $0x38] sm:$0xff]  ;;  %v68_v21 = vld [vmem:[#allocation2 + $0x40] sm:$0xff]  ;;  %v315_v23 = vmov 0.0   ;;  %v28_v35 = vand.u32 127, %v27_v34  ;;  %s316_s0 = smov [#allocation5]  }
  0x17   :  { %220 = vmatpush3.bf16.msra.mxu0 %v219_v7  ;;  %v228_v20 = vpack.c.bf16 %v67_v19, %v66_v18  ;;  %v69_v22 = vld [vmem:[#allocation2 + $0x48] sm:$0xff]  ;;  %215 = vmatprep.mubr.msk.f32.mxu0 %vm314_vm0, %v315_v23  ;;  %v70_v25 = vld [vmem:[#allocation2 + $0x50] sm:$0xff]  ;;  %v71_v26 = vld [vmem:[#allocation2 + $0x58] sm:$0xff]  ;;  %s153_s1 = sshll.u32 %s316_s0, 4  ;;  %s154_s1 = int_to_ptr.vmem [resolvable:$true] %s153_s1 }
  0x18   :  { %221 = vmatprep.subr.bf16.mxu0 %v311_v2  ;;  %v231_v24 = vpack.c.bf16 %v69_v22, %v68_v21  ;;  %v234_v27 = vpack.c.bf16 %v71_v26, %v70_v25  ;;  %v72_v28 = vld [vmem:[#allocation2 + $0x60] sm:$0xff]  ;;  %v73_v29 = vld [vmem:[#allocation2 + $0x68] sm:$0xff]  ;;  %v74_v31 = vld [vmem:[#allocation2 + $0x70] sm:$0xff]  ;;  %s280_s25 = scalar_lea.vmem %s154_s1, 128  ;;  %p285_p9 = scmp.lt.s32.totalorder %s154_s1, %s154_s1 }
  0x19   :  { %254 = vset.pattern.permute.xlu0 %v312_v15  ;;  %v237_v30 = vpack.c.bf16 %v73_v29, %v72_v28  ;;  %v75_v32 = vld [vmem:[#allocation2 + $0x78] sm:$0xff]  ;;  %p281_p8 = scmp.ne.s32.totalorder %s154_s1, %s280_s25  ;;  %p286_p10 = scmp.lt.s32.totalorder %s280_s25, %s280_s25 }
  0x1a   :  { %38 = vperm.xlu0 %254, %v36_v10   ;;  %256 = vset.pattern.permute.xlu1 %v313_v16  ;;  %v240_v33 = vpack.c.bf16 %v75_v32, %v74_v31 }
  0x1b   :  { %223 = vmatpush3.bf16.msra.mxu0 %v222_v11  ;;  %54 = vperm.xlu1 %256, %v52_v12   ;;  %p287_p11 = por %p286_p10, %p285_p9 }
  0x1c   :  { %224 = vmatprep.subr.bf16.mxu0 %v311_v2 }
  0x1d   :  { %p288_p12 = pnand %p287_p11, %p281_p8 }
  0x1e   :  { %257 = vset.pattern.permute.xlu0 %v313_v16 }
  0x1f   :  { %226 = vmatpush3.bf16.msra.mxu0 %v225_v17 }
  0x20   :  { %227 = vmatprep.subr.bf16.mxu0 %v311_v2 }
  0x23   :  { %229 = vmatpush3.bf16.msra.mxu0 %v228_v20 }
  0x24   :  { %230 = vmatprep.subr.bf16.mxu0 %v311_v2 }
  0x27   :  { %232 = vmatpush3.bf16.msra.mxu0 %v231_v24 }
  0x28   :  { %233 = vmatprep.subr.bf16.mxu0 %v311_v2 }
  0x2b   :  { %235 = vmatpush3.bf16.msra.mxu0 %v234_v27 }
  0x2c   :  { %236 = vmatprep.subr.bf16.mxu0 %v311_v2 }
  0x2f   :  { %238 = vmatpush3.bf16.msra.mxu0 %v237_v30 }
  0x30   :  { %239 = vmatprep.subr.bf16.mxu0 %v311_v2 }
  0x33   :  { %241 = vmatpush3.bf16.msra.mxu0 %v240_v33 }
  0x94   :  { %v31_v36 = vpop.permute.xlu0 %30 }
  0x95   :  { %v47_v37 = vpop.permute.xlu1 %46  ;;  %vm32_vm1 = vcmp.eq.s32.totalorder %v31_v36, %v28_v35 }
  0x96   :  { %vm48_vm2 = vcmp.eq.s32.totalorder %v47_v37, %v28_v35  ;;  %v162_v39 = vsel %vm32_vm1, 1.0, %v315_v23 }
  0x97   :  { %v164_v43 = vsel %vm48_vm2, 1.0, %v315_v23 }
  0x99   :  { %v39_v38 = vpop.permute.xlu0 %38 }
  0x9a   :  { %vm40_vm3 = vcmp.eq.s32.totalorder %v39_v38, %v28_v35  ;;  %v55_v41 = vpop.permute.xlu1 %54 }
  0x9b   :  { %v163_v40 = vsel %vm40_vm3, 1.0, %v315_v23  ;;  %vm56_vm4 = vcmp.eq.s32.totalorder %v55_v41, %v28_v35 }
  0x9c   :  { %v43_v42 = vadd.f32 %v163_v40, %v162_v39  ;;  %v165_v44 = vsel %vm56_vm4, 1.0, %v315_v23 }
  0x9e   :  { %v51_v45 = vadd.f32 %v164_v43, %v43_v42 }
  0xa0   :  { %v59_v46 = vadd.f32 %v165_v44, %v51_v45 }
  0xa2   :  { %216 = vmatmul.mubr.f32.vlgmr.msra.gmra.mrb[0].mxu0 %v59_v46 }
 0x175   :  { %v142_v47 = vpop.f32.mrb[0].mxu0 }
 0x176   :  { %146 = vst [vmem:[#allocation5] sm:$0xff] %v142_v47  ;;  %v217_v48 = vpop.f32.mrb[1].mxu0 }
 0x177   :  { %291 = shalt.err (!%p288_p12)
}
 0x178   :  { %s292_s28 = scalar_lea.hbm %s361_s2, 128 }
 0x179   :  { %p293_p13 = scmp.ne.s32.totalorder %s361_s2, %s292_s28  ;;  %p296_p0 = scmp.lt.u32.totalorder %s292_s28, %s361_s2 }
 0x17b   :  { %p298_p1 = pnand %p296_p0, %p293_p13 }
 0x17d   :  { %301 = shalt.err (!%p298_p1)
}
 0x17e   :  { %156 = dma.vmem_to_hbm [thread:$0]  %s154_s1, 128, %s361_s2, [#allocation4]  }
 0x17f   :  { %304 = dma.done.wait [#allocation4], 128  }
 0x180   :  { %305 = vsyncadd [#allocation4], 4294967168 }
 0x181   :  { %160 = vsyncpa [#allocation3], 1 }
 0x182   :  { %161 = vsyncpa [#allocation4], 1 }

</bundles_post_ra>
